<compile_context>
chip_gen: v6e
topology: v6e:2x2x1
jax: 0.10.0
libtpu: 0.0.40
codegen_flags: <defaults>
</compile_context>

<pallas_src>
import jax
import jax.numpy as jnp
from jax.experimental import pallas as pl
from jax.experimental.pallas import tpu as pltpu


def _vmem_limit_bytes():
    """Per-generation scoped-VMEM limit: VMEM capacity minus headroom, capped."""
    try:
        cap = int(pltpu.get_tpu_info().vmem_capacity_bytes)
    except Exception:
        cap = 64 * 1024 * 1024              # conservative (v7x-sized) fallback
    return int(min(max(cap - 16 * 1024 * 1024, 32 * 1024 * 1024),
                   100 * 1024 * 1024))


# -----------------------------------------------------------------------------
# Folded-lane path (small W*C): conv3x3(pad=1) == 3 block-banded matmuls.
# -----------------------------------------------------------------------------

def _fold_conv_weight(wt, w):
    """HWIO (3,3,C_in,C_out) -> (3, W*C_in, W*C_out) banded matmul weights.

    M[dy, j_in*C_in + ci, j_out*C_out + co] = wt[dy, j_in - j_out + 1, ci, co]
    (zero outside the +/-1 column band), so that
        out_fold = sum_dy  x_fold_row(i + dy - 1)  @  M[dy]
    reproduces the SAME conv, including its W zero-padding.
    """
    c_in, c_out = int(wt.shape[2]), int(wt.shape[3])
    ji = jnp.arange(w)[:, None]                     # input  column
    jo = jnp.arange(w)[None, :]                     # output column
    mats = []
    for dy in range(3):
        m = jnp.zeros((w, c_in, w, c_out), jnp.float32)
        for dx in range(3):
            sel = (ji - jo + 1 == dx).astype(jnp.float32)            # (w, w)
            m = m + sel[:, None, :, None] * \
                wt[dy, dx].astype(jnp.float32)[None, :, None, :]
        mats.append(m.reshape(w * c_in, w * c_out))
    return jnp.stack(mats, axis=0).astype(jnp.bfloat16)


def _make_folded_kernel(n_conv, h, w, chans, neg_slope, wc_pad):
    """Fused n_conv x [conv3x3 + bias + LeakyReLU] in folded (H, W*C) layout.

    refs: x_ref  (1, H, W*C_in)          bf16
          m_refs (3, W*C_l, W*C_{l+1})   bf16   banded weights, one per layer
          b_refs (1, W*C_{l+1})          f32    bias tiled over W
          o_ref  (1, H, W*C_out)         out dtype
          xh     (H+2, wc_pad)           f32    shared halo scratch
    """

    def kernel(*refs):
        x_ref = refs[0]
        m_refs = refs[1:1 + n_conv]
        b_refs = refs[1 + n_conv:1 + 2 * n_conv]
        o_ref = refs[1 + 2 * n_conv]
        xh = refs[2 + 2 * n_conv]

        # Two zero halo rows, cleared ONCE per grid step (hoisted out of the
        # layer loop -- nothing below ever writes them).  Re-cleared every
        # step (not only program_id==0) so the kernel stays correct when the
        # "parallel" batch axis is sharded across TensorCores.
        xh[0:1, :] = jnp.zeros((1, wc_pad), xh.dtype)
        xh[h + 1:h + 2, :] = jnp.zeros((1, wc_pad), xh.dtype)

        cur = x_ref[0].astype(jnp.float32)           # (H, W*C_in)

        for li in range(n_conv):
            wc_in = w * chans[li]
            wc_out = w * chans[li + 1]

            # Interior rows: one dense store.  No masked column-halo stores:
            # the W zero-padding lives inside the banded weights.
            xh[1:1 + h, :wc_in] = cur

            # 3 MXU matmuls (one per vertical tap), bf16 x bf16 -> f32 acc.
            acc = jnp.zeros((h, wc_out), jnp.float32)
            for dy in range(3):
                acc = acc + jnp.dot(
                    xh[dy:dy + h, :wc_in].astype(jnp.bfloat16),
                    m_refs[li][dy],
                    preferred_element_type=jnp.float32)

            y = acc + b_refs[li][...]                    # bias (f32)
            y = jnp.where(y > 0, y, neg_slope * y)       # LeakyReLU
            # TODO(synk): Dropout2d is identity in eval mode; stochastic
            # training-mode channel dropout (pltpu.prng_*) is not implemented.

            if li + 1 < n_conv:
                cur = y                                  # stays on-chip (f32)
            else:
                # Lane-dense output store (trailing dim = W*C_out).
                o_ref[...] = y.reshape(1, h, wc_out).astype(o_ref.dtype)

    return kernel


# -----------------------------------------------------------------------------
# Wide-channel fallback (per-tap dots already fill the MXU when C >= 128).
# -----------------------------------------------------------------------------

def _make_wide_kernel(n_conv, h, w, chans, neg_slope, c_pad):
    def kernel(*refs):
        x_ref = refs[0]
        w_refs = refs[1:1 + n_conv]
        b_refs = refs[1 + n_conv:1 + 2 * n_conv]
        o_ref = refs[1 + 2 * n_conv]
        xp = refs[2 + 2 * n_conv]                    # (H+2, W+2, c_pad) f32

        # 1-pixel zero halo, cleared once per grid step (hoisted out of the
        # layer loop; interior writes never touch it).
        xp[0:1, :, :] = jnp.zeros((1, w + 2, c_pad), xp.dtype)
        xp[h + 1:h + 2, :, :] = jnp.zeros((1, w + 2, c_pad), xp.dtype)
        xp[:, 0:1, :] = jnp.zeros((h + 2, 1, c_pad), xp.dtype)
        xp[:, w + 1:w + 2, :] = jnp.zeros((h + 2, 1, c_pad), xp.dtype)

        cur = x_ref[0].astype(jnp.float32)           # (H, W, C_in)

        for li in range(n_conv):
            c_in, c_out = chans[li], chans[li + 1]
            xp[1:1 + h, 1:1 + w, :c_in] = cur

            acc = jnp.zeros((h * w, c_out), jnp.float32)
            for dy in range(3):
                for dx in range(3):
                    patch = xp[dy:dy + h, dx:dx + w, :c_in].reshape(h * w, c_in)
                    acc = acc + jnp.dot(patch.astype(jnp.bfloat16),
                                        w_refs[li][dy, dx],
                                        preferred_element_type=jnp.float32)

            y = acc + b_refs[li][...]
            y = jnp.where(y > 0, y, neg_slope * y)
            if li + 1 < n_conv:
                cur = y.reshape(h, w, c_out)
            else:
                o_ref[...] = y.reshape(1, h, w, c_out).astype(o_ref.dtype)

    return kernel


# -----------------------------------------------------------------------------
# Wrappers
# -----------------------------------------------------------------------------

def multi_conv2d_nhwc(x_nhwc, weights_hwio, biases, *, negative_slope=0.01,
                      out_dtype=jnp.float32):
    """Fused MultiConv2d forward (eval mode), NHWC in / NHWC out."""
    n_conv = len(weights_hwio)
    b_sz, h, w, c_in0 = x_nhwc.shape
    chans = [int(c_in0)] + [int(wt.shape[-1]) for wt in weights_hwio]
    c_out = chans[-1]

    # Folded-lane path only when the banded weight matrices stay small.
    use_folded = max(chans) * w <= 1024

    if use_folded:
        wc = [w * c for c in chans]
        wc_pad = max(wc[:-1])

        x_f = x_nhwc.reshape(b_sz, h, wc[0]).astype(jnp.bfloat16)
        m_list = [_fold_conv_weight(wt, w) for wt in weights_hwio]
        b_list = [jnp.tile(bs.astype(jnp.float32), w).reshape(1, -1)
                  for bs in biases]

        in_specs = [pl.BlockSpec((1, h, wc[0]), lambda b: (b, 0, 0))]
        for li in range(n_conv):                 # banded weights: DMA'd once
            in_specs.append(pl.BlockSpec((3, wc[li], wc[li + 1]),
                                         lambda b: (0, 0, 0)))
        for li in range(n_conv):                 # folded biases: DMA'd once
            in_specs.append(pl.BlockSpec((1, wc[li + 1]), lambda b: (0, 0)))

        out = pl.pallas_call(
            _make_folded_kernel(n_conv, h, w, chans, negative_slope, wc_pad),
            out_shape=jax.ShapeDtypeStruct((b_sz, h, wc[-1]), out_dtype),
            grid_spec=pltpu.PrefetchScalarGridSpec(
                num_scalar_prefetch=0,
                grid=(b_sz,),
                in_specs=in_specs,
                out_specs=pl.BlockSpec((1, h, wc[-1]), lambda b: (b, 0, 0)),
                scratch_shapes=[pltpu.VMEM((h + 2, wc_pad), jnp.float32)],
            ),
            compiler_params=pltpu.CompilerParams(
                dimension_semantics=("parallel",),
                vmem_limit_bytes=_vmem_limit_bytes(),
            ),
        )(x_f, *m_list, *b_list)
        return out.reshape(b_sz, h, w, c_out)

    # ---- wide-channel fallback (not exercised at demo shapes) ----
    c_pad = max(chans[:-1])
    x_bf = x_nhwc.astype(jnp.bfloat16)
    w_bf = [wt.astype(jnp.bfloat16) for wt in weights_hwio]
    b_2d = [bs.reshape(1, -1).astype(jnp.float32) for bs in biases]

    in_specs = [pl.BlockSpec((1, h, w, chans[0]), lambda b: (b, 0, 0, 0))]
    for li in range(n_conv):
        in_specs.append(pl.BlockSpec((3, 3, chans[li], chans[li + 1]),
                                     lambda b: (0, 0, 0, 0)))
    for li in range(n_conv):
        in_specs.append(pl.BlockSpec((1, chans[li + 1]), lambda b: (0, 0)))

    out = pl.pallas_call(
        _make_wide_kernel(n_conv, h, w, chans, negative_slope, c_pad),
        out_shape=jax.ShapeDtypeStruct((b_sz, h, w, c_out), out_dtype),
        grid_spec=pltpu.PrefetchScalarGridSpec(
            num_scalar_prefetch=0,
            grid=(b_sz,),
            in_specs=in_specs,
            out_specs=pl.BlockSpec((1, h, w, c_out), lambda b: (b, 0, 0, 0)),
            scratch_shapes=[pltpu.VMEM((h + 2, w + 2, c_pad), jnp.float32)],
        ),
        compiler_params=pltpu.CompilerParams(
            dimension_semantics=("parallel",),
            vmem_limit_bytes=_vmem_limit_bytes(),
        ),
    )(x_bf, *w_bf, *b_2d)
    return out


def multi_conv2d(x_nchw, weights_hwio, biases, *, negative_slope=0.01):
    """PyTorch-layout boundary wrapper: [B,C,H,W] in -> [B,C,H,W] out.

    A full UNet should keep activations NHWC end-to-end and call
    multi_conv2d_nhwc directly; these two transposes are whole-tensor HBM
    read+writes and belong only at the model boundary.
    """
    x_nhwc = jnp.transpose(x_nchw, (0, 2, 3, 1))
    y = multi_conv2d_nhwc(x_nhwc, weights_hwio, biases,
                          negative_slope=negative_slope)
    return jnp.transpose(y, (0, 3, 1, 2))


def _reference_forward(x_nchw, weights_hwio, biases, *, negative_slope=0.01):
    """Pure-JAX reference with matching bf16-operand / f32-accumulate precision."""
    y = x_nchw
    for wt, bs in zip(weights_hwio, biases):
        y = jax.lax.conv_general_dilated(
            y.astype(jnp.bfloat16), wt.astype(jnp.bfloat16),
            window_strides=(1, 1), padding="SAME",
            dimension_numbers=("NCHW", "HWIO", "NCHW"),
            preferred_element_type=jnp.float32,
        )
        y = y + bs.reshape(1, -1, 1, 1)
        y = jnp.where(y > 0, y, negative_slope * y)
    return y


if __name__ == "__main__":
    key = jax.random.PRNGKey(0)

    # MultiConv2d(in_channels=4, out_channels=8, n_conv=2) in eval mode.
    B, C_in, C_out, H, W = 2, 4, 8, 16, 16
    n_conv = 2
    chans = [C_in, C_out, C_out]          # mid_channels defaults to out_channels

    keys = jax.random.split(key, 1 + 2 * n_conv)
    x = jax.random.normal(keys[0], (B, C_in, H, W), jnp.float32)
    weights = [
        jax.random.normal(keys[1 + i], (3, 3, chans[i], chans[i + 1]),
                          jnp.float32) * (1.0 / (9 * chans[i]) ** 0.5)
        for i in range(n_conv)
    ]
    biases = [
        jax.random.normal(keys[1 + n_conv + i], (chans[i + 1],), jnp.float32)
        * 0.01
        for i in range(n_conv)
    ]

    y = jax.block_until_ready(multi_conv2d(x, weights, biases))
    y_ref = _reference_forward(x, weights, biases)

    assert y.shape == (B, C_out, H, W), y.shape
    max_err = float(jnp.abs(y - y_ref).max())
    assert jnp.allclose(y, y_ref, atol=1e-2, rtol=1e-2), max_err

    print("KERNEL_OK")
</pallas_src>

<mosaic_0001>
module attributes {stable_mosaic.version = 11 : i64} {
  func.func @kernel(%arg0: i32, %arg1: memref<1x16x64xbf16, #tpu.memory_space<vmem>>, %arg2: memref<3x64x128xbf16, #tpu.memory_space<vmem>>, %arg3: memref<3x128x128xbf16, #tpu.memory_space<vmem>>, %arg4: memref<1x128xf32, #tpu.memory_space<vmem>>, %arg5: memref<1x128xf32, #tpu.memory_space<vmem>>, %arg6: memref<1x16x128xf32, #tpu.memory_space<vmem>>, %arg7: memref<18x128xf32, #tpu.memory_space<vmem>>) attributes {dimension_semantics = [#tpu.dimension_semantics<parallel>], iteration_bounds = array<i64: 2>, scalar_prefetch = 0 : i64, scratch_operands = 1 : i64, tpu.core_type = #tpu.core_type<tc>, window_params = [{transform_indices = @transform_0, window_bounds = array<i64: 1, 16, 64>}, {pipeline_mode = #tpu.pipeline_mode<synchronous>, transform_indices = @transform_1, window_bounds = array<i64: 3, 64, 128>}, {pipeline_mode = #tpu.pipeline_mode<synchronous>, transform_indices = @transform_2, window_bounds = array<i64: 3, 128, 128>}, {pipeline_mode = #tpu.pipeline_mode<synchronous>, transform_indices = @transform_3, window_bounds = array<i64: 1, 128>}, {pipeline_mode = #tpu.pipeline_mode<synchronous>, transform_indices = @transform_4, window_bounds = array<i64: 1, 128>}, {transform_indices = @transform_5, window_bounds = array<i64: 1, 16, 128>}]} {
    %cst = arith.constant 0.000000e+00 : f32
    %0 = vector.broadcast %cst : f32 to vector<1x128xf32>
    %c0 = arith.constant 0 : index
    %c0_0 = arith.constant 0 : index
    %1 = vector.load %arg7[%c0, %c0_0] : memref<18x128xf32, #tpu.memory_space<vmem>>, vector<1x128xf32>
    tpu.vector_store %arg7[%c0, %c0_0], %0 {strides = array<i32>} : memref<18x128xf32, #tpu.memory_space<vmem>>, vector<1x128xf32>,
    %cst_1 = arith.constant 0.000000e+00 : f32
    %2 = vector.broadcast %cst_1 : f32 to vector<1x128xf32>
    %c17 = arith.constant 17 : index
    %c0_2 = arith.constant 0 : index
    %3 = vector.load %arg7[%c17, %c0_2] : memref<18x128xf32, #tpu.memory_space<vmem>>, vector<1x128xf32>
    tpu.vector_store %arg7[%c17, %c0_2], %2 {strides = array<i32>} : memref<18x128xf32, #tpu.memory_space<vmem>>, vector<1x128xf32>,
    %c0_3 = arith.constant 0 : index
    %c0_4 = arith.constant 0 : index
    %c0_5 = arith.constant 0 : index
    %4 = vector.load %arg1[%c0_3, %c0_4, %c0_5] : memref<1x16x64xbf16, #tpu.memory_space<vmem>>, vector<1x16x64xbf16>
    %5 = vector.shape_cast %4 : vector<1x16x64xbf16> to vector<16x64xbf16>
    %6 = arith.extf %5 : vector<16x64xbf16> to vector<16x64xf32>
    %c1 = arith.constant 1 : index
    %c0_6 = arith.constant 0 : index
    %7 = vector.load %arg7[%c1, %c0_6] : memref<18x128xf32, #tpu.memory_space<vmem>>, vector<16x64xf32>
    tpu.vector_store %arg7[%c1, %c0_6], %6 {strides = array<i32>} : memref<18x128xf32, #tpu.memory_space<vmem>>, vector<16x64xf32>,
    %cst_7 = arith.constant 0.000000e+00 : f32
    %8 = vector.broadcast %cst_7 : f32 to vector<16x128xf32>
    %c0_8 = arith.constant 0 : index
    %c0_9 = arith.constant 0 : index
    %9 = vector.load %arg7[%c0_8, %c0_9] : memref<18x128xf32, #tpu.memory_space<vmem>>, vector<16x64xf32>
    %10 = arith.truncf %9 : vector<16x64xf32> to vector<16x64xbf16>
    %c0_10 = arith.constant 0 : index
    %c0_11 = arith.constant 0 : index
    %c0_12 = arith.constant 0 : index
    %11 = vector.load %arg2[%c0_10, %c0_11, %c0_12] : memref<3x64x128xbf16, #tpu.memory_space<vmem>>, vector<1x64x128xbf16>
    %12 = vector.shape_cast %11 : vector<1x64x128xbf16> to vector<64x128xbf16>
    %cst_13 = arith.constant dense<0.000000e+00> : vector<16x128xf32>
    %13 = tpu.matmul %10, %12, %cst_13 {dimension_numbers = #tpu.dot_dimension_numbers<[1], [0], [0], [1], [0, 0, 1, 1], [], []>} : vector<16x64xbf16>, vector<64x128xbf16>, vector<16x128xf32> -> vector<16x128xf32>
    %14 = arith.addf %8, %13 : vector<16x128xf32>
    %c1_14 = arith.constant 1 : index
    %c0_15 = arith.constant 0 : index
    %15 = vector.load %arg7[%c1_14, %c0_15] : memref<18x128xf32, #tpu.memory_space<vmem>>, vector<16x64xf32>
    %16 = arith.truncf %15 : vector<16x64xf32> to vector<16x64xbf16>
    %c1_16 = arith.constant 1 : index
    %c0_17 = arith.constant 0 : index
    %c0_18 = arith.constant 0 : index
    %17 = vector.load %arg2[%c1_16, %c0_17, %c0_18] : memref<3x64x128xbf16, #tpu.memory_space<vmem>>, vector<1x64x128xbf16>
    %18 = vector.shape_cast %17 : vector<1x64x128xbf16> to vector<64x128xbf16>
    %cst_19 = arith.constant dense<0.000000e+00> : vector<16x128xf32>
    %19 = tpu.matmul %16, %18, %cst_19 {dimension_numbers = #tpu.dot_dimension_numbers<[1], [0], [0], [1], [0, 0, 1, 1], [], []>} : vector<16x64xbf16>, vector<64x128xbf16>, vector<16x128xf32> -> vector<16x128xf32>
    %20 = arith.addf %14, %19 : vector<16x128xf32>
    %c2 = arith.constant 2 : index
    %c0_20 = arith.constant 0 : index
    %21 = vector.load %arg7[%c2, %c0_20] : memref<18x128xf32, #tpu.memory_space<vmem>>, vector<16x64xf32>
    %22 = arith.truncf %21 : vector<16x64xf32> to vector<16x64xbf16>
    %c2_21 = arith.constant 2 : index
    %c0_22 = arith.constant 0 : index
    %c0_23 = arith.constant 0 : index
    %23 = vector.load %arg2[%c2_21, %c0_22, %c0_23] : memref<3x64x128xbf16, #tpu.memory_space<vmem>>, vector<1x64x128xbf16>
    %24 = vector.shape_cast %23 : vector<1x64x128xbf16> to vector<64x128xbf16>
    %cst_24 = arith.constant dense<0.000000e+00> : vector<16x128xf32>
    %25 = tpu.matmul %22, %24, %cst_24 {dimension_numbers = #tpu.dot_dimension_numbers<[1], [0], [0], [1], [0, 0, 1, 1], [], []>} : vector<16x64xbf16>, vector<64x128xbf16>, vector<16x128xf32> -> vector<16x128xf32>
    %26 = arith.addf %20, %25 : vector<16x128xf32>
    %c0_25 = arith.constant 0 : index
    %c0_26 = arith.constant 0 : index
    %27 = vector.load %arg4[%c0_25, %c0_26] : memref<1x128xf32, #tpu.memory_space<vmem>>, vector<1x128xf32>
    %28 = vector.broadcast %27 : vector<1x128xf32> to vector<16x128xf32>
    %29 = arith.addf %26, %28 : vector<16x128xf32>
    %cst_27 = arith.constant 0.000000e+00 : f32
    %30 = vector.broadcast %cst_27 : f32 to vector<16x128xf32>
    %31 = arith.cmpf ogt, %29, %30 : vector<16x128xf32>
    %cst_28 = arith.constant 0.00999999977 : f32
    %32 = vector.broadcast %cst_28 : f32 to vector<16x128xf32>
    %33 = arith.mulf %32, %29 : vector<16x128xf32>
    %34 = arith.select %31, %29, %33 : vector<16x128xi1>, vector<16x128xf32>
    %c1_29 = arith.constant 1 : index
    %c0_30 = arith.constant 0 : index
    %35 = vector.load %arg7[%c1_29, %c0_30] : memref<18x128xf32, #tpu.memory_space<vmem>>, vector<16x128xf32>
    tpu.vector_store %arg7[%c1_29, %c0_30], %34 {strides = array<i32>} : memref<18x128xf32, #tpu.memory_space<vmem>>, vector<16x128xf32>,
    %cst_31 = arith.constant 0.000000e+00 : f32
    %36 = vector.broadcast %cst_31 : f32 to vector<16x128xf32>
    %c0_32 = arith.constant 0 : index
    %c0_33 = arith.constant 0 : index
    %37 = vector.load %arg7[%c0_32, %c0_33] : memref<18x128xf32, #tpu.memory_space<vmem>>, vector<16x128xf32>
    %38 = arith.truncf %37 : vector<16x128xf32> to vector<16x128xbf16>
    %c0_34 = arith.constant 0 : index
    %c0_35 = arith.constant 0 : index
    %c0_36 = arith.constant 0 : index
    %39 = vector.load %arg3[%c0_34, %c0_35, %c0_36] : memref<3x128x128xbf16, #tpu.memory_space<vmem>>, vector<1x128x128xbf16>
    %40 = vector.shape_cast %39 : vector<1x128x128xbf16> to vector<128x128xbf16>
    %cst_37 = arith.constant dense<0.000000e+00> : vector<16x128xf32>
    %41 = tpu.matmul %38, %40, %cst_37 {dimension_numbers = #tpu.dot_dimension_numbers<[1], [0], [0], [1], [0, 0, 1, 1], [], []>} : vector<16x128xbf16>, vector<128x128xbf16>, vector<16x128xf32> -> vector<16x128xf32>
    %42 = arith.addf %36, %41 : vector<16x128xf32>
    %c1_38 = arith.constant 1 : index
    %c0_39 = arith.constant 0 : index
    %43 = vector.load %arg7[%c1_38, %c0_39] : memref<18x128xf32, #tpu.memory_space<vmem>>, vector<16x128xf32>
    %44 = arith.truncf %43 : vector<16x128xf32> to vector<16x128xbf16>
    %c1_40 = arith.constant 1 : index
    %c0_41 = arith.constant 0 : index
    %c0_42 = arith.constant 0 : index
    %45 = vector.load %arg3[%c1_40, %c0_41, %c0_42] : memref<3x128x128xbf16, #tpu.memory_space<vmem>>, vector<1x128x128xbf16>
    %46 = vector.shape_cast %45 : vector<1x128x128xbf16> to vector<128x128xbf16>
    %cst_43 = arith.constant dense<0.000000e+00> : vector<16x128xf32>
    %47 = tpu.matmul %44, %46, %cst_43 {dimension_numbers = #tpu.dot_dimension_numbers<[1], [0], [0], [1], [0, 0, 1, 1], [], []>} : vector<16x128xbf16>, vector<128x128xbf16>, vector<16x128xf32> -> vector<16x128xf32>
    %48 = arith.addf %42, %47 : vector<16x128xf32>
    %c2_44 = arith.constant 2 : index
    %c0_45 = arith.constant 0 : index
    %49 = vector.load %arg7[%c2_44, %c0_45] : memref<18x128xf32, #tpu.memory_space<vmem>>, vector<16x128xf32>
    %50 = arith.truncf %49 : vector<16x128xf32> to vector<16x128xbf16>
    %c2_46 = arith.constant 2 : index
    %c0_47 = arith.constant 0 : index
    %c0_48 = arith.constant 0 : index
    %51 = vector.load %arg3[%c2_46, %c0_47, %c0_48] : memref<3x128x128xbf16, #tpu.memory_space<vmem>>, vector<1x128x128xbf16>
    %52 = vector.shape_cast %51 : vector<1x128x128xbf16> to vector<128x128xbf16>
    %cst_49 = arith.constant dense<0.000000e+00> : vector<16x128xf32>
    %53 = tpu.matmul %50, %52, %cst_49 {dimension_numbers = #tpu.dot_dimension_numbers<[1], [0], [0], [1], [0, 0, 1, 1], [], []>} : vector<16x128xbf16>, vector<128x128xbf16>, vector<16x128xf32> -> vector<16x128xf32>
    %54 = arith.addf %48, %53 : vector<16x128xf32>
    %c0_50 = arith.constant 0 : index
    %c0_51 = arith.constant 0 : index
    %55 = vector.load %arg5[%c0_50, %c0_51] : memref<1x128xf32, #tpu.memory_space<vmem>>, vector<1x128xf32>
    %56 = vector.broadcast %55 : vector<1x128xf32> to vector<16x128xf32>
    %57 = arith.addf %54, %56 : vector<16x128xf32>
    %cst_52 = arith.constant 0.000000e+00 : f32
    %58 = vector.broadcast %cst_52 : f32 to vector<16x128xf32>
    %59 = arith.cmpf ogt, %57, %58 : vector<16x128xf32>
    %cst_53 = arith.constant 0.00999999977 : f32
    %60 = vector.broadcast %cst_53 : f32 to vector<16x128xf32>
    %61 = arith.mulf %60, %57 : vector<16x128xf32>
    %62 = arith.select %59, %57, %61 : vector<16x128xi1>, vector<16x128xf32>
    %63 = vector.shape_cast %62 : vector<16x128xf32> to vector<1x16x128xf32>
    %c0_54 = arith.constant 0 : index
    %c0_55 = arith.constant 0 : index
    %c0_56 = arith.constant 0 : index
    %64 = vector.load %arg6[%c0_54, %c0_55, %c0_56] : memref<1x16x128xf32, #tpu.memory_space<vmem>>, vector<1x16x128xf32>
    tpu.vector_store %arg6[%c0_54, %c0_55, %c0_56], %63 {strides = array<i32>} : memref<1x16x128xf32, #tpu.memory_space<vmem>>, vector<1x16x128xf32>,
    return
  }
  func.func @transform_0(%arg0: i32) -> (i32, i32, i32) {
    %c0_i32 = arith.constant 0 : i32
    %c0_i32_0 = arith.constant 0 : i32
    %c0_i32_1 = arith.constant 0 : i32
    return %arg0, %c0_i32, %c0_i32_0 : i32, i32, i32
  }
  func.func @transform_1(%arg0: i32) -> (i32, i32, i32) {
    %c0_i32 = arith.constant 0 : i32
    %c0_i32_0 = arith.constant 0 : i32
    %c0_i32_1 = arith.constant 0 : i32
    %c0_i32_2 = arith.constant 0 : i32
    return %c0_i32, %c0_i32_0, %c0_i32_1 : i32, i32, i32
  }
  func.func @transform_2(%arg0: i32) -> (i32, i32, i32) {
    %c0_i32 = arith.constant 0 : i32
    %c0_i32_0 = arith.constant 0 : i32
    %c0_i32_1 = arith.constant 0 : i32
    %c0_i32_2 = arith.constant 0 : i32
    return %c0_i32, %c0_i32_0, %c0_i32_1 : i32, i32, i32
  }
  func.func @transform_3(%arg0: i32) -> (i32, i32) {
    %c0_i32 = arith.constant 0 : i32
    %c0_i32_0 = arith.constant 0 : i32
    %c0_i32_1 = arith.constant 0 : i32
    return %c0_i32, %c0_i32_0 : i32, i32
  }
  func.func @transform_4(%arg0: i32) -> (i32, i32) {
    %c0_i32 = arith.constant 0 : i32
    %c0_i32_0 = arith.constant 0 : i32
    %c0_i32_1 = arith.constant 0 : i32
    return %c0_i32, %c0_i32_0 : i32, i32
  }
  func.func @transform_5(%arg0: i32) -> (i32, i32, i32) {
    %c0_i32 = arith.constant 0 : i32
    %c0_i32_0 = arith.constant 0 : i32
    %c0_i32_1 = arith.constant 0 : i32
    return %arg0, %c0_i32, %c0_i32_0 : i32, i32, i32
  }
}

</mosaic_0001>

<bundles_post_ra>
// kernel: tpu_custom_call.1
= control target key start
LH: loop header
LB: loop body
LE: loop exit
PB: predicated region body
PF: predicated region fallthrough
CT: control target
= control target key end

     0   :  { %10 = vsyncpa [#allocation4], 0  ;;  %s1752_s0 = inlined_call_operand.hbm [shape: bf16[2,16,64], index: 0, kind: input, shape index: {}]   ;;  %s1753_s1 = inlined_call_operand.hbm [shape: bf16[3,64,128], index: 1, kind: input, shape index: {}]   ;;  %s1754_s2 = inlined_call_operand.hbm [shape: bf16[3,128,128], index: 2, kind: input, shape index: {}]   ;;  %s1755_s3 = inlined_call_operand.vmem [shape: f32[1,128], index: 3, kind: input, shape index: {}]   ;;  %s1756_s4 = inlined_call_operand.vmem [shape: f32[1,128], index: 4, kind: input, shape index: {}]   ;;  %s1757_s5 = inlined_call_operand.hbm [shape: f32[2,16,128], index: 5, kind: output, shape index: {}]  }
   0x1   :  { %12 = vsyncpa [#allocation4 + $0x1], 0 }
   0x2   :  { %13 = vsyncpa [#allocation7], 0 }
   0x3   :  { %14 = vsyncpa [#allocation5], 0 }
   0x4   :  { %16 = vsyncpa [#allocation5 + $0x1], 0  ;;  %s1493_s18 = smov 0   ;;  %s1495_s19 = smov 0  }
   0x5   :  { %s1497_s20 = smov 0   ;;  %s1499_s21 = smov 0  }
   0x6 LB: > { %s1514_s22 = sadd.s32 4294967295, %s1451_s21   ;;  %s991_s23 = sadd.s32 4294967294, %s1451_s21   ;;  %s1451_s21 = sphi %s1499_s21, %s1780_s21   ;;  %s1447_s20 = sphi %s1497_s20, %s1779_s20   ;;  %s1443_s19 = sphi %s1495_s19, %s1778_s19   ;;  %s1439_s18 = sphi %s1493_s18, %s1777_s18  }
   0x7   : > { %p42_p0 = scmp.ne.s32.totalorder %s1443_s19, %s1439_s18  ;;  %p1758_p1 = scmp.eq.s32.totalorder %s1514_s22, 0 }
   0x8   : > { %p150_p2 = scmp.eq.s32.totalorder %s1514_s22, 1  ;;  %p156_p3 = scmp.eq.s32.totalorder %s991_s23, 1 }
   0x9   : > { %p1523_p4 = por %p1758_p1, %p42_p0  ;;  %p992_p5 = scmp.ge.s32.totalorder %s1451_s21, 1 }
   0xa   : > { %p1528_p6 = por %p156_p3, %p42_p0  ;;  %p163_p7 = scmp.lt.s32.totalorder %s1451_s21, 3 }
   0xb   : > { %s1763_s24 = scalar_select %p1523_p4, 1, 0 }
   0xc   : > { %s1764_s25 = scalar_select %p1528_p6, 1, 0 }
   0xd   : > { %p1533_p8 = pnand %p992_p5, %p163_p7  ;;  %s1453_s27 = smov [#allocation6]  }
   0xe   : > { %s175_s28 = sshll.u32 %s1453_s27, 4  ;;  %s1454_s30 = smov [#allocation8]   ;;  %s176_s28 = int_to_ptr.vmem [resolvable:$true] %s175_s28 }
   0xf   : > { %s1765_s26 = scalar_select %p1533_p8, 1, 0 }
  0x10   : > { %p1206_p9 = pneg %p1533_p8  ;;  %s188_s6 = sshll.u32 %s1454_s30, 4  ;;  %s189_s6 = int_to_ptr.vmem [resolvable:$true] %s188_s6 }
  0x11   : > { %s1314_s7 = scalar_lea.vmem %s176_s28, 1536  ;;  %p1322_p5 = scmp.lt.s32.totalorder %s176_s28, %s176_s28 }
  0x12   : > { %p1542_p11 = pnand %p1206_p9, %p1758_p1  ;;  %p1315_p13 = scmp.ne.s32.totalorder %s176_s28, %s1314_s7 }
  0x13   : > { %p1323_p7 = scmp.lt.s32.totalorder %s1314_s7, %s1314_s7 }
  0x14   : > { %p1305_p12 = pneg %p1542_p11 }
  0x15   : > { %p1324_p10 = por %p1323_p7, %p1322_p5 }
  0x16   : > { %p1317_p0 = pnand %p1315_p13, %p1305_p12 }
  0x18   : > { %p1318_p3 = pneg %p1317_p0 }
  0x1a   : > { %p1325_p9 = pnand %p1324_p10, %p1318_p3 }
  0x1c   : > { %1328 = shalt.err (!%p1325_p9)
}
  0x1d   : > { %s1759_s8 = smov 64   ;;  %s1456_s9 = smov 4  }
  0x1e   : > { %1209 = dma.hbm_to_vmem [thread:$0]  (!%p1542_p11), %s1753_s1, 1536, %s176_s28, [#allocation7], %s1759_s8, %s1759_s8, %s1456_s9  }
  0x1f   : > { %s1340_s12 = scalar_lea.vmem %s189_s6, 3072  ;;  %p1348_p10 = scmp.lt.s32.totalorder %s189_s6, %s189_s6 }
  0x20   : > { %p1341_p13 = scmp.ne.s32.totalorder %s189_s6, %s1340_s12  ;;  %p1349_p3 = scmp.lt.s32.totalorder %s1340_s12, %s1340_s12 }
  0x22   : > { %p1343_p0 = pnand %p1341_p13, %p1305_p12  ;;  %p1350_p7 = por %p1349_p3, %p1348_p10 }
  0x24   : > { %p1344_p5 = pneg %p1343_p0 }
  0x26   : > { %p1351_p9 = pnand %p1350_p7, %p1344_p5 }
  0x28   : > { %1354 = shalt.err (!%p1351_p9)
}
  0x29   : > { %1212 = dma.hbm_to_vmem [thread:$0]  (!%p1542_p11), %s1754_s2, 3072, %s189_s6, [#allocation7], %s1759_s8, %s1759_s8, %s1456_s9  }
  0x2a   : > { %s1571_s15 = sadd.s32 1, %s1451_s21   ;;  %s29_s16 = sadd.s32 1, %s1447_s20 }
  0x2b   : > { %s26_s17 = ssub.s32 %s1451_s21, %s1571_s15  ;;  %p36_p12 = scmp.ne.s32.totalorder %s1447_s20, %s1443_s19 }
  0x2c   : > { %p27_p13 = scmp.eq.s32.totalorder %s26_s17, 0  ;;  %p37_p0 = scmp.eq.s32.totalorder %s1451_s21, 0 }
  0x2d   : > { %p1581_p5 = por %p150_p2, %p36_p12  ;;  %p1223_p10 = scmp.lt.s32.totalorder %s1451_s21, 2 }
  0x2e   : > { %s1587_s27 = scalar_select %p27_p13, %s1447_s20, %s29_s16  }
  0x2f   : > { %s1767_s23 = scalar_select %p1581_p5, 1, 0 }
  0x30   : > { %p38_p3 = por %p37_p0, %p36_p12  ;;  %s208_s28 = sand.u32 1, %s1447_s20  }
  0x31   : > { %s996_s29 = sshll.u32 %s208_s28, 3  ;;  %s1050_s30 = sshll.u32 %s1451_s21, 7 }
  0x32   : > { %s1594_s10 = scalar_lea.hbm %s1752_s0, %s1050_s30  ;;  %s212_s11 = scalar_lea.vmem [#allocation3], %s996_s29 }
  0x33   : > { %s219_s12 = sshll.u32 %s212_s11, 4  ;;  %p1598_p2 = pnand %p1223_p10, %p38_p3  ;;  %s1596_s12 = int_to_ptr.vmem [resolvable:$true] %s219_s12 }
  0x34   : > { %s1602_s14 = scalar_lea.sflag [#allocation4], %s208_s28  ;;  %s1355_s16 = scalar_lea.hbm %s1594_s10, 128 }
  0x35   : > { %p1356_p11 = scmp.ne.s32.totalorder %s1594_s10, %s1355_s16  ;;  %p1357_p7 = pneg %p1598_p2 }
  0x36   : > { %s1360_s29 = scalar_lea.hbm %s1752_s0, 256  ;;  %p1361_p13 = scmp.lt.s32.totalorder %s1594_s10, %s1752_s0 }
  0x37   : > { %p1358_p9 = pnand %p1357_p7, %p1356_p11  ;;  %p1362_p0 = scmp.lt.s32.totalorder %s1360_s29, %s1355_s16 }
  0x39   : > { %p1359_p12 = pneg %p1358_p9  ;;  %p1363_p10 = por %p1362_p0, %p1361_p13 }
  0x3b   : > { %p1364_p3 = pnand %p1363_p10, %p1359_p12 }
  0x3d   : > { %1367 = shalt.err (!%p1364_p3)
}
  0x3e   : > { %s1368_s28 = scalar_lea.vmem %s1596_s12, 128  ;;  %s1457_s11 = smov [#allocation3]  }
  0x3f   : > { %p1369_p1 = scmp.ne.s32.totalorder %s1596_s12, %s1368_s28  ;;  %s1373_s8 = sshll.u32 %s1457_s11, 4  ;;  %s1374_s8 = int_to_ptr.vmem [resolvable:$false] %s1373_s8 }
  0x40   : > { %s1375_s17 = scalar_lea.vmem %s1374_s8, 256  ;;  %p1376_p9 = scmp.lt.s32.totalorder %s1596_s12, %s1374_s8 }
  0x41   : > { %p1371_p6 = pnand %p1369_p1, %p1357_p7  ;;  %p1377_p5 = scmp.lt.s32.totalorder %s1375_s17, %s1368_s28 }
  0x43   : > { %p1372_p11 = pneg %p1371_p6  ;;  %p1378_p4 = por %p1377_p5, %p1376_p9 }
  0x45   : > { %p1379_p8 = pnand %p1378_p4, %p1372_p11 }
  0x47   : > { %1382 = shalt.err (!%p1379_p8)
}
  0x48   : > { %s1769_s16 = smov 64   ;;  %p1770_p1 = scmp.ne.s32.totalorder %s1765_s26, 0 }
  0x49   : > { %1216 = dma.hbm_to_vmem [thread:$0]  (!%p1598_p2), %s1594_s10, 128, %s1596_s12, %s1602_s14, %s1769_s16, %s1769_s16, %s1456_s9  }
  0x4a   : > { %231 = sbr.rel (%p1770_p1) target bundleno = 573 (0x23d), region = 40  ;;  %s1629_s30 = sand.u32 (!%p1770_p1), 1, %s1443_s19  }
  0x4b   : > { %s1000_s8 = sshll.u32 (!%p1770_p1), %s1629_s30, 3  ;;  %s234_s29 = scalar_lea.sflag (!%p1770_p1), [#allocation4], %s1629_s30 }
  0x4c   : > { %s237_s6 = scalar_lea.vmem (!%p1770_p1), [#allocation3], %s1000_s8  ;;  %p1771_p4 = scmp.ne.s32.totalorder (!%p1770_p1), %s1763_s24, 0 }
  0x4f   : > { %1426 = dma.done.wait (%p1771_p4), %s234_s29, 128  }
  0x50   : > { %1428 = vsyncadd (%p1771_p4), %s234_s29, 4294967168  ;;  %p1772_p6 = scmp.eq.s32.totalorder %s1514_s22, 0 }
  0x52   : > { %1430 = dma.done.wait (%p1772_p6), [#allocation7], 4608   ;;  %p1773_p8 = pmov %p1772_p6 }
  0x53   : > { %v1458_v0 = vmov 0.0   ;;  %vm1459_vm0 = vmmov 0   ;;  %v1267_v1 = vld [vmem:[#allocation6 + $0x38] sm:$0xff]   ;;  %v1269_v3 = vld [vmem:[#allocation6 + $0x30] sm:$0xff]   ;;  %v1271_v5 = vld [vmem:[#allocation6 + $0x28] sm:$0xff]   ;;  %vm279_vm1 = vcmask 523264  }
  0x54   : > { %1432 = vsyncadd (%p1773_p8), [#allocation7], 4294962688  ;;  %1098 = vmatprep.subr.bf16.mxu0 %v1458_v0  ;;  %273 = vst [vmem:[#allocation2] sm:$0x1] %v1458_v0  ;;  %1110 = vmatprep.subr.bf16.mxu1 %v1458_v0  ;;  %v1268_v2 = vld [vmem:[#allocation6 + $0x18] sm:$0xff]   ;;  %v1270_v4 = vld [vmem:[#allocation6 + $0x10] sm:$0xff]  }
  0x55   : > { %274 = vst [vmem:[#allocation2 + $0x11] sm:$0x1] %v1458_v0  ;;  %1106 = vmatprep.mubr.msk.bf16.mxu0 %vm1459_vm0, %v1458_v0  ;;  %1118 = vmatprep.mubr.msk.bf16.mxu1 %vm1459_vm0, %v1458_v0  ;;  %v1272_v6 = vld [vmem:[#allocation6 + $0x8] sm:$0xff]   ;;  %v1053_v7 = vld [vmem:[%s237_s6] sm:$0xff]   ;;  %v1273_v10 = vld [vmem:[#allocation6 + $0x20] sm:$0xff]   ;;  %s1003_s12 = sshll.u32 %s1629_s30, 4 }
  0x56   : > { %1099 = vmatpush3.bf16.msra.mxu0 %v1267_v1  ;;  %1111 = vmatpush3.bf16.msra.mxu1 %v1268_v2  ;;  %v1054_v8 = vunpack.c.l.bf16 %v1053_v7  ;;  %v1055_v9 = vunpack.c.h.bf16 %v1053_v7  ;;  %v1274_v11 = vld [vmem:[#allocation6] sm:$0xff]   ;;  %v1275_v12 = vld [vmem:[#allocation6 + $0x58] sm:$0xff]   ;;  %v1276_v19 = vld [vmem:[#allocation6 + $0x50] sm:$0xff]   ;;  %s271_s13 = scalar_lea.vmem [#allocation9], %s1003_s12  ;;  %s1051_s7 = sshll.u32 %s1514_s22, 8 }
  0x57   : > { %1100 = vmatprep.subr.bf16.mxu0 %v1458_v0  ;;  %1112 = vmatprep.subr.bf16.mxu1 %v1458_v0  ;;  %v1277_v20 = vld [vmem:[#allocation6 + $0x48] sm:$0xff]   ;;  %v1278_v21 = vld [vmem:[#allocation6 + $0x40] sm:$0xff]   ;;  %v1279_v25 = vld [vmem:[#allocation8 + $0x78] sm:$0xff]   ;;  %s899_s14 = sshll.u32 %s271_s13, 4  ;;  %s1709_s17 = scalar_lea.hbm %s1757_s5, %s1051_s7  ;;  %s1704_s14 = int_to_ptr.vmem [resolvable:$true] %s899_s14 }
  0x58   : > { %280 = vst.msk [vmem:[#allocation2 + $0x1] sm:$0xff] %vm279_vm1, %v1054_v8  ;;  %281 = vst.msk [vmem:[#allocation2 + $0x9] sm:$0xff] %vm279_vm1, %v1055_v9  ;;  %v1281_v26 = vld [vmem:[#allocation8 + $0x70] sm:$0xff]   ;;  %v1283_v27 = vld [vmem:[#allocation8 + $0x68] sm:$0xff]   ;;  %s886_s16 = scalar_lea.sflag [#allocation5], %s1629_s30  ;;  %s1383_s8 = scalar_lea.vmem %s1704_s14, 256 }
  0x59   : > { %v1280_v28 = vld [vmem:[#allocation8 + $0x38] sm:$0xff]   ;;  %v1282_v29 = vld [vmem:[#allocation8 + $0x30] sm:$0xff]   ;;  %v1285_v30 = vld [vmem:[#allocation8 + $0x60] sm:$0xff]   ;;  %p1384_p5 = scmp.ne.s32.totalorder %s1704_s14, %s1383_s8  ;;  %p1774_p2 = scmp.ne.s32.totalorder %s1767_s23, 0 }
  0x5a   : > { %1101 = vmatpush3.bf16.msra.mxu0 %v1269_v3  ;;  %1113 = vmatpush3.bf16.msra.mxu1 %v1270_v4  ;;  %v1284_v31 = vld [vmem:[#allocation8 + $0x28] sm:$0xff]   ;;  %v1287_v32 = vld [vmem:[#allocation8 + $0x58] sm:$0xff]   ;;  %v1289_v33 = vld [vmem:[#allocation8 + $0x50] sm:$0xff]   ;;  %s1460_s22 = smov [#allocation9]  }
  0x5b   : > { %1102 = vmatprep.subr.bf16.mxu0 %v1458_v0  ;;  %1114 = vmatprep.subr.bf16.mxu1 %v1458_v0  ;;  %v1286_v34 = vld [vmem:[#allocation8 + $0x20] sm:$0xff]   ;;  %v1291_v35 = vld [vmem:[#allocation8 + $0x48] sm:$0xff]   ;;  %v1288_v36 = vld [vmem:[#allocation8 + $0x18] sm:$0xff]   ;;  %p1385_p7 = pnand %p1384_p5, %p1774_p2  ;;  %s1387_s29 = sshll.u32 %s1460_s22, 4  ;;  %s1388_s29 = int_to_ptr.vmem [resolvable:$false] %s1387_s29 }
  0x5c   : > { %v1293_v37 = vld [vmem:[#allocation8 + $0x40] sm:$0xff]   ;;  %v1290_v38 = vld [vmem:[#allocation8 + $0x10] sm:$0xff]   ;;  %v1292_v39 = vld [vmem:[#allocation8 + $0x8] sm:$0xff]   ;;  %s1389_s6 = scalar_lea.vmem %s1388_s29, 512  ;;  %p1390_p13 = scmp.lt.s32.totalorder %s1704_s14, %s1388_s29 }
  0x5d   : > { %v1294_v40 = vld [vmem:[#allocation8] sm:$0xff]   ;;  %v1019_v51 = vld [vmem:[%s1755_s3] ss:$0 sm:$0xff]  ;;  %v1296_v3 = vld [vmem:[#allocation8 + $0xb0] sm:$0xff]   ;;  %p1386_p12 = pneg %p1385_p7  ;;  %p1391_p0 = scmp.lt.s32.totalorder %s1389_s6, %s1383_s8 }
  0x5e   : > { %1103 = vmatpush3.bf16.msra.mxu0 %v1271_v5  ;;  %1115 = vmatpush3.bf16.msra.mxu1 %v1272_v6  ;;  %v1295_v1 = vld [vmem:[#allocation8 + $0xb8] sm:$0xff]   ;;  %v1297_v6 = vld [vmem:[#allocation8 + $0xa8] sm:$0xff]   ;;  %v1298_v8 = vld [vmem:[#allocation8 + $0xa0] sm:$0xff]  }
  0x5f   : > { %1104 = vmatprep.subr.bf16.mxu0 %v1458_v0  ;;  %1116 = vmatprep.subr.bf16.mxu1 %v1458_v0  ;;  %v293_v13 = vld [vmem:[#allocation2 + $0x1] sm:$0xff]  ;;  %v294_v14 = vld [vmem:[#allocation2 + $0x9] sm:$0xff]  ;;  %p1392_p10 = por %p1391_p0, %p1390_p13 }
  0x60   : > { %v282_v15 = vld [vmem:[#allocation2] sm:$0xff]  ;;  %v295_v16 = vpack.c.bf16 %v294_v14, %v293_v13  ;;  %v283_v17 = vld [vmem:[#allocation2 + $0x8] sm:$0xff] }
  0x61   : > { %v284_v18 = vpack.c.bf16 %v283_v17, %v282_v15  ;;  %v441_v22 = vld [vmem:[#allocation2 + $0x2] sm:$0xff]  ;;  %v442_v23 = vld [vmem:[#allocation2 + $0xa] sm:$0xff]  ;;  %p1393_p3 = pnand %p1392_p10, %p1386_p12 }
  0x62   : > { %1105 = vmatpush3.bf16.msra.mxu0 %v1273_v10  ;;  %1117 = vmatpush3.bf16.msra.mxu1 %v1274_v11  ;;  %v443_v24 = vpack.c.bf16 %v442_v23, %v441_v22  ;;  %v1299_v9 = vld [vmem:[#allocation8 + $0x98] sm:$0xff]   ;;  %v1300_v10 = vld [vmem:[#allocation8 + $0x90] sm:$0xff]   ;;  %v1301_v11 = vld [vmem:[#allocation8 + $0x88] sm:$0xff]  }
  0x63   : > { %1122 = vmatprep.subr.bf16.mxu0 %v1458_v0  ;;  %1134 = vmatprep.subr.bf16.mxu1 %v1458_v0 }
  0x65   : > { %1107 = vmatmul.mubr.msk.bf16.vlgmr.msra.gmra.mxu0 %vm279_vm1, %v295_v16  ;;  %1119 = vmatmul.mubr.msk.bf16.vlgmr.msra.gmra.mxu1 %vm279_vm1, %v284_v18 }
  0x66   : > { %1123 = vmatpush3.bf16.msra.mxu0 %v1275_v12  ;;  %1130 = vmatprep.mubr.msk.bf16.mxu0 %vm1459_vm0, %v1458_v0  ;;  %v1302_v12 = vld [vmem:[#allocation8 + $0x80] sm:$0xff]  }
  0x67   : > { %1124 = vmatprep.subr.bf16.mxu0 %v1458_v0  ;;  %1150 = vmatprep.mubr.msk.bf16.mxu1 %vm1459_vm0, %v1458_v0 }
  0x68   : > { %1135 = vmatpush3.bf16.msra.mxu1 %v1279_v25 }
  0x69   : > { %1136 = vmatprep.subr.bf16.mxu1 %v1458_v0 }
  0x6a   : > { %1125 = vmatpush3.bf16.msra.mxu0 %v1276_v19 }
  0x6b   : > { %1126 = vmatprep.subr.bf16.mxu0 %v1458_v0 }
  0x6c   : > { %1137 = vmatpush3.bf16.msra.mxu1 %v1281_v26 }
  0x6d   : > { %1138 = vmatprep.subr.bf16.mxu1 %v1458_v0 }
  0x6e   : > { %1127 = vmatpush3.bf16.msra.mxu0 %v1277_v20 }
  0x6f   : > { %1128 = vmatprep.subr.bf16.mxu0 %v1458_v0 }
  0x70   : > { %1139 = vmatpush3.bf16.msra.mxu1 %v1283_v27 }
  0x71   : > { %1140 = vmatprep.subr.bf16.mxu1 %v1458_v0 }
  0x72   : > { %1129 = vmatpush3.bf16.msra.mxu0 %v1278_v21 }
  0x73   : > { %1154 = vmatprep.subr.bf16.mxu0 %v1458_v0 }
  0x74   : > { %1141 = vmatpush3.bf16.msra.mxu1 %v1285_v30 }
  0x75   : > { %1131 = vmatmul.mubr.msk.bf16.vlgmr.msra.gmra.mxu0 %vm279_vm1, %v443_v24  ;;  %1142 = vmatprep.subr.bf16.mxu1 %v1458_v0 }
  0x76   : > { %1170 = vmatprep.mubr.msk.bf16.mxu0 %vm1459_vm0, %v1458_v0  ;;  %1155 = vmatpush3.bf16.msra.mxu0 %v1280_v28 }
  0x77   : > { %1156 = vmatprep.subr.bf16.mxu0 %v1458_v0 }
  0x78   : > { %1143 = vmatpush3.bf16.msra.mxu1 %v1287_v32 }
  0x79   : > { %1144 = vmatprep.subr.bf16.mxu1 %v1458_v0 }
  0x7a   : > { %1157 = vmatpush3.bf16.msra.mxu0 %v1282_v29 }
  0x7b   : > { %1158 = vmatprep.subr.bf16.mxu0 %v1458_v0 }
  0x7c   : > { %1145 = vmatpush3.bf16.msra.mxu1 %v1289_v33 }
  0x7d   : > { %1146 = vmatprep.subr.bf16.mxu1 %v1458_v0 }
  0x7e   : > { %1159 = vmatpush3.bf16.msra.mxu0 %v1284_v31 }
  0x7f   : > { %1160 = vmatprep.subr.bf16.mxu0 %v1458_v0 }
  0x80   : > { %1147 = vmatpush3.bf16.msra.mxu1 %v1291_v35 }
  0x81   : > { %1148 = vmatprep.subr.bf16.mxu1 %v1458_v0 }
  0x82   : > { %1161 = vmatpush3.bf16.msra.mxu0 %v1286_v34 }
  0x83   : > { %1162 = vmatprep.subr.bf16.mxu0 %v1458_v0 }
  0x84   : > { %1149 = vmatpush3.bf16.msra.mxu1 %v1293_v37 }
  0x85   : > { %1174 = vmatprep.subr.bf16.mxu1 %v1458_v0 }
  0x86   : > { %1163 = vmatpush3.bf16.msra.mxu0 %v1288_v36 }
  0x87   : > { %1164 = vmatprep.subr.bf16.mxu0 %v1458_v0 }
  0x8a   : > { %1165 = vmatpush3.bf16.msra.mxu0 %v1290_v38 }
  0x8b   : > { %1166 = vmatprep.subr.bf16.mxu0 %v1458_v0 }
  0x8e   : > { %1167 = vmatpush3.bf16.msra.mxu0 %v1292_v39 }
  0x8f   : > { %1168 = vmatprep.subr.bf16.mxu0 %v1458_v0 }
  0x92   : > { %1169 = vmatpush3.bf16.msra.mxu0 %v1294_v40 }
 0x125   : > { %v366_v41 = vpop.f32.mrf.mxu0  ;;  %v434_v42 = vpop.f32.mrf.mxu1 }
 0x126   : > { %v435_v49 = vadd.f32 %v434_v42, %v366_v41 }
 0x127   : > { %v1108_v43 = vpop.f32.mrf.mxu0  ;;  %v1120_v44 = vpop.f32.mrf.mxu1 }
 0x129   : > { %v369_v45 = vpop.f32.mrf.mxu0  ;;  %v437_v46 = vpop.f32.mrf.mxu1 }
 0x12a   : > { %v438_v54 = vadd.f32 %v437_v46, %v369_v45 }
 0x12b   : > { %v1109_v47 = vpop.f32.mrf.mxu0  ;;  %v1121_v48 = vpop.f32.mrf.mxu1 }
 0x135   : > { %v514_v50 = vpop.f32.mrf.mxu0 }
 0x136   : > { %v521_v52 = vadd.f32 %v514_v50, %v435_v49 }
 0x137   : > { %v1132_v53 = vpop.f32.mrf.mxu0 }
 0x138   : > { %v530_v55 = vadd.f32 %v1019_v51, %v521_v52 }
 0x139   : > { %v517_v56 = vpop.f32.mrf.mxu0 }
 0x13a   : > { %vm532_vm2 = vcmp.gt.f32.partialorder %v530_v55, 0.0  ;;  %v534_v57 = vmul.f32 0.01, %v530_v55  ;;  %v522_v58 = vadd.f32 %v517_v56, %v438_v54 }
 0x13b   : > { %v1133_v59 = vpop.f32.mrf.mxu0 }
 0x13c   : > { %v536_v60 = vsel %vm532_vm2, %v530_v55, %v534_v57  ;;  %v531_v61 = vadd.f32 %v1019_v51, %v522_v58 }
 0x13d   : > { %538 = vst [vmem:[#allocation2 + $0x1] sm:$0xff] %v536_v60 }
 0x13e   : > { %vm533_vm3 = vcmp.gt.f32.partialorder %v531_v61, 0.0  ;;  %v535_v62 = vmul.f32 0.01, %v531_v61 }
 0x140   : > { %v537_v63 = vsel %vm533_vm3, %v531_v61, %v535_v62 }
 0x141   : > { %539 = vst [vmem:[#allocation2 + $0x9] sm:$0xff] %v537_v63  ;;  %v561_v2 = vpack.c.bf16 %v537_v63, %v536_v60 }
 0x143   : > { %1151 = vmatmul.mubr.bf16.vlgmr.msra.gmra.mxu1 %v561_v2 }
 0x144   : > { %1175 = vmatpush3.bf16.msra.mxu1 %v1295_v1  ;;  %1190 = vmatprep.mubr.msk.bf16.mxu1 %vm1459_vm0, %v1458_v0  ;;  %v540_v4 = vld [vmem:[#allocation2] sm:$0xff] }
 0x145   : > { %1176 = vmatprep.subr.bf16.mxu1 %v1458_v0 }
 0x148   : > { %v541_v5 = vld [vmem:[#allocation2 + $0x8] sm:$0xff]  ;;  %1177 = vmatpush3.bf16.msra.mxu1 %v1296_v3 }
 0x149   : > { %v542_v7 = vpack.c.bf16 %v541_v5, %v540_v4  ;;  %1178 = vmatprep.subr.bf16.mxu1 %v1458_v0  ;;  %v757_v13 = vld [vmem:[#allocation2 + $0x2] sm:$0xff]  ;;  %v758_v14 = vld [vmem:[#allocation2 + $0xa] sm:$0xff] }
 0x14a   : > { %v759_v15 = vpack.c.bf16 %v758_v14, %v757_v13 }
 0x14b   : > { %1171 = vmatmul.mubr.bf16.vlgmr.msra.gmra.mxu0 %v542_v7 }
 0x14c   : > { %1179 = vmatpush3.bf16.msra.mxu1 %v1297_v6 }
 0x14d   : > { %1180 = vmatprep.subr.bf16.mxu1 %v1458_v0 }
 0x150   : > { %1181 = vmatpush3.bf16.msra.mxu1 %v1298_v8 }
 0x151   : > { %1182 = vmatprep.subr.bf16.mxu1 %v1458_v0 }
 0x154   : > { %1183 = vmatpush3.bf16.msra.mxu1 %v1299_v9 }
 0x155   : > { %1184 = vmatprep.subr.bf16.mxu1 %v1458_v0 }
 0x158   : > { %1185 = vmatpush3.bf16.msra.mxu1 %v1300_v10 }
 0x159   : > { %1186 = vmatprep.subr.bf16.mxu1 %v1458_v0 }
 0x15c   : > { %1187 = vmatpush3.bf16.msra.mxu1 %v1301_v11 }
 0x15d   : > { %1188 = vmatprep.subr.bf16.mxu1 %v1458_v0  ;;  %v1044_v0 = vld [vmem:[%s1756_s4] ss:$0 sm:$0xff] }
 0x160   : > { %1189 = vmatpush3.bf16.msra.mxu1 %v1302_v12 }
 0x163   : > { %1191 = vmatmul.mubr.bf16.vlgmr.msra.gmra.mxu1 %v759_v15 }
 0x203   : > { %v661_v16 = vpop.f32.mrf.mxu1 }
 0x205   : > { %v1152_v17 = vpop.f32.mrf.mxu1 }
 0x207   : > { %v664_v18 = vpop.f32.mrf.mxu1 }
 0x209   : > { %v1153_v19 = vpop.f32.mrf.mxu1 }
 0x20b   : > { %v750_v20 = vpop.f32.mrf.mxu0 }
 0x20c   : > { %v751_v24 = vadd.f32 %v750_v20, %v661_v16 }
 0x20d   : > { %v1172_v21 = vpop.f32.mrf.mxu0 }
 0x20f   : > { %v753_v22 = vpop.f32.mrf.mxu0 }
 0x210   : > { %v754_v28 = vadd.f32 %v753_v22, %v664_v18 }
 0x211   : > { %v1173_v23 = vpop.f32.mrf.mxu0 }
 0x223   : > { %v859_v25 = vpop.f32.mrf.mxu1 }
 0x224   : > { %v866_v26 = vadd.f32 %v859_v25, %v751_v24 }
 0x225   : > { %v1192_v27 = vpop.f32.mrf.mxu1 }
 0x226   : > { %v875_v29 = vadd.f32 %v1044_v0, %v866_v26 }
 0x227   : > { %v862_v30 = vpop.f32.mrf.mxu1 }
 0x228   : > { %vm877_vm4 = vcmp.gt.f32.partialorder %v875_v29, 0.0  ;;  %v879_v31 = vmul.f32 0.01, %v875_v29  ;;  %v867_v32 = vadd.f32 %v862_v30, %v754_v28 }
 0x229   : > { %v1193_v33 = vpop.f32.mrf.mxu1 }
 0x22a   : > { %v881_v34 = vsel %vm877_vm4, %v875_v29, %v879_v31  ;;  %v876_v35 = vadd.f32 %v1044_v0, %v867_v32 }
 0x22b   : > { %883 = vst [vmem:[%s271_s13] sm:$0xff] %v881_v34 }
 0x22c   : > { %vm878_vm5 = vcmp.gt.f32.partialorder %v876_v35, 0.0  ;;  %v880_v36 = vmul.f32 0.01, %v876_v35 }
 0x22e   : > { %v882_v37 = vsel %vm878_vm5, %v876_v35, %v880_v36 }
 0x22f   : > { %884 = vst [vmem:[%s271_s13 + $0x8] sm:$0xff] %v882_v37 }
 0x230   : > { %1396 = shalt.err (!%p1393_p3)
}
 0x231   : > { %s1397_s24 = scalar_lea.hbm %s1709_s17, 256  ;;  %s1401_s10 = scalar_lea.hbm %s1757_s5, 512 }
 0x232   : > { %p1398_p11 = scmp.ne.s32.totalorder %s1709_s17, %s1397_s24  ;;  %p1402_p4 = scmp.lt.s32.totalorder %s1709_s17, %s1757_s5 }
 0x233   : > { %p1403_p6 = scmp.lt.s32.totalorder %s1401_s10, %s1397_s24 }
 0x234   : > { %p1399_p9 = pnand %p1398_p11, %p1774_p2 }
 0x235   : > { %p1404_p8 = por %p1403_p6, %p1402_p4 }
 0x236   : > { %p1400_p1 = pneg %p1399_p9 }
 0x238   : > { %p1405_p5 = pnand %p1404_p8, %p1400_p1 }
 0x23a   : > { %1408 = shalt.err (!%p1405_p5)
}
 0x23b   : > { %s1461_s7 = smov 128   ;;  %s1462_s28 = smov 8  }
 0x23c   : > { %1204 = dma.vmem_to_hbm [thread:$0]  (%p1774_p2), %s1704_s14, 256, %s1709_s17, %s886_s16, %s1461_s7, %s1461_s7, %s1462_s28  }
 0x23d PF: > { %s914_s11 = sand.u32 1, %s1439_s18   ;;  %p1775_p7 = scmp.ne.s32.totalorder %s1764_s25, 0 }
 0x23e   : > { %p1776_p12 = scmp.ge.s32.totalorder %s1451_s21, 2  ;;  %s915_s8 = scalar_lea.sflag [#allocation5], %s914_s11 }
 0x240   : > { %p1218_p13 = pnand %p1776_p12, %p1775_p7 }
 0x242   : > { %p1219_p0 = pneg %p1218_p13 }
 0x244   : > { %1434 = dma.done.wait (%p1219_p0), %s915_s8, 256  }
 0x245   : > { %1436 = vsyncadd (%p1219_p0), %s915_s8, 4294967040  ;;  %p19_p10 = scmp.ge.s32.totalorder %s1571_s15, 4   ;;  %s1777_s18 = smov %s1443_s19 }
 0x246   : > { %s1778_s19 = smov %s1447_s20  ;;  %s1779_s20 = smov %s1587_s27 }
 0x247   : > { %s1780_s21 = smov %s1571_s15  ;;  %21 = sbr.rel (!%p19_p10) target bundleno = 6 (0x6), region = 97 }
 0x24c   :  { %920 = vsyncpa [#allocation4], 1 }
 0x24d   :  { %922 = vsyncpa [#allocation4 + $0x1], 1 }
 0x24e   :  { %923 = vsyncpa [#allocation7], 1 }
 0x24f   :  { %924 = vsyncpa [#allocation5], 1 }
 0x250   :  { %926 = vsyncpa [#allocation5 + $0x1], 1 }

</bundles_post_ra>
